<compile_context>
chip_gen: v7x
topology: tpu7x:2x2x1
jax: 0.10.0
libtpu: 0.0.40
codegen_flags: <defaults>
</compile_context>

<pallas_src>
import functools

import jax
import jax.numpy as jnp
from jax.experimental import pallas as pl
from jax.experimental.pallas import tpu as pltpu

LANE = 128      # TPU lane width (last dim)
SUBLANE = 8     # TPU sublane width (second-to-last dim, f32)
_EPS = 1e-5     # nn.LayerNorm default eps


def _round_up(x, m):
    return ((x + m - 1) // m) * m


def _cdiv(a, b):
    return (a + b - 1) // b


# ----------------------------------------------------------------------------
# Fused kernel body (built per network structure)
# ----------------------------------------------------------------------------
def _make_decoder_kernel(hidden_dims):
    """hidden_dims = [(real_width, padded_width), ...] for every hidden layer."""
    num_hidden = len(hidden_dims)

    def kernel(alpha_ref, x_ref, *refs):
        # refs = (w, bgb) * num_hidden + (w_final, b_final) + (o_ref,)
        o_ref = refs[-1]
        h = x_ref[...].astype(jnp.float32)
        for l, (real_h, pad_h) in enumerate(hidden_dims):
            w_ref = refs[2 * l]
            bgb_ref = refs[2 * l + 1]

            # Linear on the MXU: bf16 operands, f32 accumulation.  Padded
            # weight columns are exactly zero (zero is exact in bf16), so
            # padded output lanes are exactly 0.0.
            y = jnp.dot(h.astype(jnp.bfloat16), w_ref[...],
                        preferred_element_type=jnp.float32)
            bgb = bgb_ref[...]                    # (3, pad_h): bias, gamma, beta
            y = y + bgb[0:1, :]

            # Two-pass LayerNorm over the REAL feature width (f32 epilogue).
            inv_h = 1.0 / float(real_h)
            mean = jnp.sum(y, axis=-1, keepdims=True) * inv_h
            d = y - mean
            if pad_h > real_h:
                # Mask padded lanes so they contribute 0 to the variance.
                lane = jax.lax.broadcasted_iota(jnp.int32, d.shape, d.ndim - 1)
                d = jnp.where(lane < real_h, d, 0.0)
            var = jnp.sum(d * d, axis=-1, keepdims=True) * inv_h
            y = d * jax.lax.rsqrt(var + _EPS)
            # gamma/beta are zero-padded -> padded lanes stay exactly 0.
            y = y * bgb[1:2, :] + bgb[2:3, :]

            # PReLU, single shared slope read from SMEM (scalar path).
            # TODO(synk): per-channel PReLU (num_parameters=h_dim) would need a
            # (1, pad_h) VMEM slope vector instead of this SMEM scalar.
            a = alpha_ref[l]
            h = jnp.where(y >= 0.0, y, a * y)
            # Dropout = identity at inference.

        wf_ref = refs[2 * num_hidden]
        bf_ref = refs[2 * num_hidden + 1]
        yo = jnp.dot(h.astype(jnp.bfloat16), wf_ref[...],
                     preferred_element_type=jnp.float32)
        o_ref[...] = (yo + bf_ref[...]).astype(o_ref.dtype)

    return kernel


# ----------------------------------------------------------------------------
# Wrapper: padding + single pallas_call
# ----------------------------------------------------------------------------
@functools.partial(jax.jit, static_argnames=("max_batch_tile",))
def decoder_forward(params, x, *, max_batch_tile=256):
    hidden = params["hidden"]
    w_fin, b_fin = params["final"]
    num_hidden = len(hidden)

    B, Din = x.shape
    Dout = w_fin.shape[1]

    # ---- lane-dense geometry -------------------------------------------------
    Din_p = _round_up(Din, LANE)
    hid_real = [w.shape[1] for (w, _, _, _, _) in hidden]
    hid_p = [_round_up(h, LANE) for h in hid_real]
    Dout_p = _round_up(Dout, LANE)

    # Balanced batch tiles: at most one sublane (<8 rows) of padding waste per
    # tile, and >= 2 grid steps whenever the batch allows (keeps both v7x TCs
    # busy along the parallel batch axis).
    min_tiles = 2 if B >= 2 * SUBLANE else 1
    num_tiles = max(_cdiv(B, max_batch_tile), min_tiles)
    TB = _round_up(_cdiv(B, num_tiles), SUBLANE)
    B_p = num_tiles * TB

    def pad2(a, r, c):
        return jnp.pad(a, ((0, r - a.shape[0]), (0, c - a.shape[1])))

    # ---- padded operands + specs ----------------------------------------------
    x_p = pad2(x, B_p, Din_p).astype(jnp.float32)

    flat_inputs = []
    inv_specs = []          # grid-invariant operands -> single-buffered
    alphas = []
    prev_p = Din_p
    flops = 0
    for (w, b, g, be, a), hp in zip(hidden, hid_p):
        w_pad = pad2(w, prev_p, hp).astype(jnp.bfloat16)          # MXU operand
        bgb = jnp.concatenate(                                     # (3, hp) f32
            [pad2(b, 1, hp), pad2(g, 1, hp), pad2(be, 1, hp)], axis=0
        ).astype(jnp.float32)
        flat_inputs += [w_pad, bgb]
        inv_specs += [
            pl.BlockSpec((prev_p, hp), lambda i: (0, 0),
                         pipeline_mode=pl.Buffered(1)),            # weight
            pl.BlockSpec((3, hp), lambda i: (0, 0),
                         pipeline_mode=pl.Buffered(1)),            # bias/gamma/beta
        ]
        alphas.append(a.reshape(()))
        flops += 2 * B_p * prev_p * hp
        prev_p = hp

    wf_pad = pad2(w_fin, prev_p, Dout_p).astype(jnp.bfloat16)
    bf_pad = pad2(b_fin, 1, Dout_p).astype(jnp.float32)
    flat_inputs += [wf_pad, bf_pad]
    inv_specs += [
        pl.BlockSpec((prev_p, Dout_p), lambda i: (0, 0),
                     pipeline_mode=pl.Buffered(1)),
        pl.BlockSpec((1, Dout_p), lambda i: (0, 0),
                     pipeline_mode=pl.Buffered(1)),
    ]
    flops += 2 * B_p * prev_p * Dout_p

    alpha_vec = (jnp.stack(alphas).astype(jnp.float32)
                 if alphas else jnp.zeros((1,), jnp.float32))

    # ---- VMEM budget & cost estimate ------------------------------------------
    weight_bytes = sum(int(t.size) * t.dtype.itemsize for t in flat_inputs)
    stream_bytes = 2 * TB * (Din_p + Dout_p) * 4        # double-buffered x / out
    act_bytes = 4 * TB * max(hid_p + [Din_p, Dout_p]) * 4
    needed = weight_bytes + stream_bytes + act_bytes
    # <= 56 MiB is safe on every generation (v7x physical VMEM is 64 MiB).
    vmem_limit = int(min(max(2 * needed + (4 << 20), 32 << 20), 56 << 20))

    cost = pl.CostEstimate(
        flops=int(flops),
        transcendentals=int(B_p * max(num_hidden, 1)),      # rsqrt per row/layer
        bytes_accessed=int(weight_bytes + B_p * Din_p * 4 + B_p * Dout_p * 4),
    )

    kernel = _make_decoder_kernel(list(zip(hid_real, hid_p)))

    out_p = pl.pallas_call(
        kernel,
        out_shape=jax.ShapeDtypeStruct((B_p, Dout_p), jnp.float32),
        grid=(num_tiles,),
        in_specs=[pl.BlockSpec(memory_space=pltpu.MemorySpace.SMEM),   # alpha_vec
                  pl.BlockSpec((TB, Din_p), lambda i: (i, 0))]         # x tile
                 + inv_specs,
        out_specs=pl.BlockSpec((TB, Dout_p), lambda i: (i, 0)),
        compiler_params=pltpu.CompilerParams(
            dimension_semantics=("parallel",),
            vmem_limit_bytes=vmem_limit),
        cost_estimate=cost,
    )(alpha_vec, x_p, *flat_inputs)

    return out_p[:B, :Dout].astype(x.dtype)


# ----------------------------------------------------------------------------
# Parameter init + pure-JAX references
# ----------------------------------------------------------------------------
def init_decoder_params(key, output_dim, n, e_dim, hidden_dim):
    """Deterministic synthetic init (PyTorch-style uniform(-1/sqrt(fan_in), .))."""
    params = {"hidden": [], "final": None}
    indim = n * e_dim
    for h_dim in hidden_dim:
        key, kw, kb = jax.random.split(key, 3)
        bound = 1.0 / jnp.sqrt(float(indim))
        w = jax.random.uniform(kw, (indim, h_dim), jnp.float32, -bound, bound)
        b = jax.random.uniform(kb, (1, h_dim), jnp.float32, -bound, bound)
        gamma = jnp.ones((1, h_dim), jnp.float32)       # LayerNorm weight
        beta = jnp.zeros((1, h_dim), jnp.float32)       # LayerNorm bias
        alpha = jnp.full((1, 1), 0.25, jnp.float32)     # PReLU default init
        params["hidden"].append((w, b, gamma, beta, alpha))
        indim = h_dim
    key, kw, kb = jax.random.split(key, 3)
    bound = 1.0 / jnp.sqrt(float(indim))
    w = jax.random.uniform(kw, (indim, output_dim), jnp.float32, -bound, bound)
    b = jax.random.uniform(kb, (1, output_dim), jnp.float32, -bound, bound)
    params["final"] = (w, b)
    return params


def decoder_reference(params, x, *, mxu_dtype=jnp.float32):
    """Pure-JAX reference of the PyTorch forward (eval mode).

    mxu_dtype=jnp.bfloat16 reproduces the kernel's numerics (bf16 matmul
    operands, f32 accumulation, f32 epilogue)."""
    h = x.astype(jnp.float32)
    for (w, b, gamma, beta, alpha) in params["hidden"]:
        y = jnp.dot(h.astype(mxu_dtype), w.astype(mxu_dtype),
                    preferred_element_type=jnp.float32) + b
        mean = jnp.mean(y, axis=-1, keepdims=True)
        var = jnp.mean((y - mean) ** 2, axis=-1, keepdims=True)
        y = (y - mean) * jax.lax.rsqrt(var + _EPS)
        y = y * gamma + beta
        h = jnp.where(y >= 0.0, y, alpha[0, 0] * y)
    w, b = params["final"]
    return jnp.dot(h.astype(mxu_dtype), w.astype(mxu_dtype),
                   preferred_element_type=jnp.float32) + b


# ----------------------------------------------------------------------------
if __name__ == "__main__":
    # Small shapes consistent with the module's forward:
    #   input  (batch_size, n * e_dim)   output (batch_size, output_dim)
    batch_size = 48                      # exercises a 2-step parallel batch grid
    n, e_dim = 2, 4                      # input dim = 8
    hidden_dim = (32, 16)
    output_dim = 12
    dropout_rate = 0.1                   # unused at inference

    key = jax.random.PRNGKey(0)
    kp, kx = jax.random.split(key)
    params = init_decoder_params(kp, output_dim, n, e_dim, hidden_dim)
    x = jax.random.normal(kx, (batch_size, n * e_dim), jnp.float32)

    out = jax.block_until_ready(decoder_forward(params, x))

    assert out.shape == (batch_size, output_dim)

    # Primary check: identical math (bf16 MXU operands, f32 accumulation/epilogue).
    ref_matched = decoder_reference(params, x, mxu_dtype=jnp.bfloat16)
    assert jnp.allclose(out, ref_matched, atol=2e-3, rtol=2e-3), \
        "Pallas output mismatch vs bf16-matched reference"

    # Diagnostic only: deviation from full-f32 math (expected ~bf16-level).
    ref_f32 = decoder_reference(params, x, mxu_dtype=jnp.float32)
    _max_f32_diff = float(jnp.max(jnp.abs(out - ref_f32)))

    print("KERNEL_OK")
</pallas_src>

<mosaic_0001>
module attributes {stable_mosaic.version = 11 : i64} {
  func.func @kernel(%arg0: i32, %arg1: memref<2xf32, #tpu.memory_space<smem>>, %arg2: memref<24x128xf32, #tpu.memory_space<vmem>>, %arg3: memref<128x128xbf16, #tpu.memory_space<vmem>>, %arg4: memref<3x128xf32, #tpu.memory_space<vmem>>, %arg5: memref<128x128xbf16, #tpu.memory_space<vmem>>, %arg6: memref<3x128xf32, #tpu.memory_space<vmem>>, %arg7: memref<128x128xbf16, #tpu.memory_space<vmem>>, %arg8: memref<1x128xf32, #tpu.memory_space<vmem>>, %arg9: memref<24x128xf32, #tpu.memory_space<vmem>>) attributes {dimension_semantics = [#tpu.dimension_semantics<parallel>], iteration_bounds = array<i64: 2>, scalar_prefetch = 0 : i64, scratch_operands = 0 : i64, tpu.core_type = #tpu.core_type<tc>, window_params = [{transform_indices = @transform_0, window_bounds = array<i64: 2>}, {transform_indices = @transform_1, window_bounds = array<i64: 24, 128>}, {pipeline_mode = #tpu.pipeline_mode<synchronous>, transform_indices = @transform_2, window_bounds = array<i64: 128, 128>}, {pipeline_mode = #tpu.pipeline_mode<synchronous>, transform_indices = @transform_3, window_bounds = array<i64: 3, 128>}, {pipeline_mode = #tpu.pipeline_mode<synchronous>, transform_indices = @transform_4, window_bounds = array<i64: 128, 128>}, {pipeline_mode = #tpu.pipeline_mode<synchronous>, transform_indices = @transform_5, window_bounds = array<i64: 3, 128>}, {pipeline_mode = #tpu.pipeline_mode<synchronous>, transform_indices = @transform_6, window_bounds = array<i64: 128, 128>}, {pipeline_mode = #tpu.pipeline_mode<synchronous>, transform_indices = @transform_7, window_bounds = array<i64: 1, 128>}, {transform_indices = @transform_8, window_bounds = array<i64: 24, 128>}]} {
    %c0 = arith.constant 0 : index
    %c0_0 = arith.constant 0 : index
    %0 = vector.load %arg2[%c0, %c0_0] : memref<24x128xf32, #tpu.memory_space<vmem>>, vector<24x128xf32>
    %1 = arith.truncf %0 : vector<24x128xf32> to vector<24x128xbf16>
    %c0_1 = arith.constant 0 : index
    %c0_2 = arith.constant 0 : index
    %2 = vector.load %arg3[%c0_1, %c0_2] : memref<128x128xbf16, #tpu.memory_space<vmem>>, vector<128x128xbf16>
    %cst = arith.constant dense<0.000000e+00> : vector<24x128xf32>
    %3 = tpu.matmul %1, %2, %cst {dimension_numbers = #tpu.dot_dimension_numbers<[1], [0], [0], [1], [0, 0, 1, 1], [], []>} : vector<24x128xbf16>, vector<128x128xbf16>, vector<24x128xf32> -> vector<24x128xf32>
    %c0_3 = arith.constant 0 : index
    %c0_4 = arith.constant 0 : index
    %4 = vector.load %arg4[%c0_3, %c0_4] : memref<3x128xf32, #tpu.memory_space<vmem>>, vector<3x128xf32>
    %5 = vector.extract_strided_slice %4 {offsets = [0, 0], sizes = [1, 128], strides = [1, 1]} : vector<3x128xf32> to vector<1x128xf32>
    %6 = vector.broadcast %5 : vector<1x128xf32> to vector<24x128xf32>
    %7 = arith.addf %3, %6 : vector<24x128xf32>
    %cst_5 = arith.constant dense<0.000000e+00> : vector<24xf32>
    %8 = vector.multi_reduction <add>, %7, %cst_5 [1] : vector<24x128xf32> to vector<24xf32>
    %9 = vector.shape_cast %8 : vector<24xf32> to vector<24x1xf32>
    %cst_6 = arith.constant 3.125000e-02 : f32
    %10 = vector.broadcast %cst_6 : f32 to vector<24x1xf32>
    %11 = arith.mulf %9, %10 : vector<24x1xf32>
    %12 = vector.broadcast %11 : vector<24x1xf32> to vector<24x128xf32>
    %13 = arith.subf %7, %12 : vector<24x128xf32>
    %14 = tpu.iota {dimensions = array<i32: 1>} : vector<24x128xi32>
    %c32_i32 = arith.constant 32 : i32
    %15 = vector.broadcast %c32_i32 : i32 to vector<24x128xi32>
    %16 = arith.cmpi slt, %14, %15 : vector<24x128xi32>
    %cst_7 = arith.constant 0.000000e+00 : f32
    %17 = vector.broadcast %cst_7 : f32 to vector<24x128xf32>
    %18 = arith.select %16, %13, %17 : vector<24x128xi1>, vector<24x128xf32>
    %19 = arith.mulf %18, %18 : vector<24x128xf32>
    %cst_8 = arith.constant dense<0.000000e+00> : vector<24xf32>
    %20 = vector.multi_reduction <add>, %19, %cst_8 [1] : vector<24x128xf32> to vector<24xf32>
    %21 = vector.shape_cast %20 : vector<24xf32> to vector<24x1xf32>
    %cst_9 = arith.constant 3.125000e-02 : f32
    %22 = vector.broadcast %cst_9 : f32 to vector<24x1xf32>
    %23 = arith.mulf %21, %22 : vector<24x1xf32>
    %cst_10 = arith.constant 9.99999974E-6 : f32
    %24 = vector.broadcast %cst_10 : f32 to vector<24x1xf32>
    %25 = arith.addf %23, %24 : vector<24x1xf32>
    %26 = math.rsqrt %25 : vector<24x1xf32>
    %27 = vector.broadcast %26 : vector<24x1xf32> to vector<24x128xf32>
    %28 = arith.mulf %18, %27 : vector<24x128xf32>
    %29 = vector.extract_strided_slice %4 {offsets = [1, 0], sizes = [1, 128], strides = [1, 1]} : vector<3x128xf32> to vector<1x128xf32>
    %30 = vector.broadcast %29 : vector<1x128xf32> to vector<24x128xf32>
    %31 = arith.mulf %28, %30 : vector<24x128xf32>
    %32 = vector.extract_strided_slice %4 {offsets = [2, 0], sizes = [1, 128], strides = [1, 1]} : vector<3x128xf32> to vector<1x128xf32>
    %33 = vector.broadcast %32 : vector<1x128xf32> to vector<24x128xf32>
    %34 = arith.addf %31, %33 : vector<24x128xf32>
    %c0_11 = arith.constant 0 : index
    %35 = memref.load %arg1[%c0_11] : memref<2xf32, #tpu.memory_space<smem>>
    %cst_12 = arith.constant 0.000000e+00 : f32
    %36 = vector.broadcast %cst_12 : f32 to vector<24x128xf32>
    %37 = arith.cmpf oge, %34, %36 : vector<24x128xf32>
    %38 = vector.broadcast %35 : f32 to vector<24x128xf32>
    %39 = arith.mulf %38, %34 : vector<24x128xf32>
    %40 = arith.select %37, %34, %39 : vector<24x128xi1>, vector<24x128xf32>
    %41 = arith.truncf %40 : vector<24x128xf32> to vector<24x128xbf16>
    %c0_13 = arith.constant 0 : index
    %c0_14 = arith.constant 0 : index
    %42 = vector.load %arg5[%c0_13, %c0_14] : memref<128x128xbf16, #tpu.memory_space<vmem>>, vector<128x128xbf16>
    %cst_15 = arith.constant dense<0.000000e+00> : vector<24x128xf32>
    %43 = tpu.matmul %41, %42, %cst_15 {dimension_numbers = #tpu.dot_dimension_numbers<[1], [0], [0], [1], [0, 0, 1, 1], [], []>} : vector<24x128xbf16>, vector<128x128xbf16>, vector<24x128xf32> -> vector<24x128xf32>
    %c0_16 = arith.constant 0 : index
    %c0_17 = arith.constant 0 : index
    %44 = vector.load %arg6[%c0_16, %c0_17] : memref<3x128xf32, #tpu.memory_space<vmem>>, vector<3x128xf32>
    %45 = vector.extract_strided_slice %44 {offsets = [0, 0], sizes = [1, 128], strides = [1, 1]} : vector<3x128xf32> to vector<1x128xf32>
    %46 = vector.broadcast %45 : vector<1x128xf32> to vector<24x128xf32>
    %47 = arith.addf %43, %46 : vector<24x128xf32>
    %cst_18 = arith.constant dense<0.000000e+00> : vector<24xf32>
    %48 = vector.multi_reduction <add>, %47, %cst_18 [1] : vector<24x128xf32> to vector<24xf32>
    %49 = vector.shape_cast %48 : vector<24xf32> to vector<24x1xf32>
    %cst_19 = arith.constant 6.250000e-02 : f32
    %50 = vector.broadcast %cst_19 : f32 to vector<24x1xf32>
    %51 = arith.mulf %49, %50 : vector<24x1xf32>
    %52 = vector.broadcast %51 : vector<24x1xf32> to vector<24x128xf32>
    %53 = arith.subf %47, %52 : vector<24x128xf32>
    %54 = tpu.iota {dimensions = array<i32: 1>} : vector<24x128xi32>
    %c16_i32 = arith.constant 16 : i32
    %55 = vector.broadcast %c16_i32 : i32 to vector<24x128xi32>
    %56 = arith.cmpi slt, %54, %55 : vector<24x128xi32>
    %cst_20 = arith.constant 0.000000e+00 : f32
    %57 = vector.broadcast %cst_20 : f32 to vector<24x128xf32>
    %58 = arith.select %56, %53, %57 : vector<24x128xi1>, vector<24x128xf32>
    %59 = arith.mulf %58, %58 : vector<24x128xf32>
    %cst_21 = arith.constant dense<0.000000e+00> : vector<24xf32>
    %60 = vector.multi_reduction <add>, %59, %cst_21 [1] : vector<24x128xf32> to vector<24xf32>
    %61 = vector.shape_cast %60 : vector<24xf32> to vector<24x1xf32>
    %cst_22 = arith.constant 6.250000e-02 : f32
    %62 = vector.broadcast %cst_22 : f32 to vector<24x1xf32>
    %63 = arith.mulf %61, %62 : vector<24x1xf32>
    %cst_23 = arith.constant 9.99999974E-6 : f32
    %64 = vector.broadcast %cst_23 : f32 to vector<24x1xf32>
    %65 = arith.addf %63, %64 : vector<24x1xf32>
    %66 = math.rsqrt %65 : vector<24x1xf32>
    %67 = vector.broadcast %66 : vector<24x1xf32> to vector<24x128xf32>
    %68 = arith.mulf %58, %67 : vector<24x128xf32>
    %69 = vector.extract_strided_slice %44 {offsets = [1, 0], sizes = [1, 128], strides = [1, 1]} : vector<3x128xf32> to vector<1x128xf32>
    %70 = vector.broadcast %69 : vector<1x128xf32> to vector<24x128xf32>
    %71 = arith.mulf %68, %70 : vector<24x128xf32>
    %72 = vector.extract_strided_slice %44 {offsets = [2, 0], sizes = [1, 128], strides = [1, 1]} : vector<3x128xf32> to vector<1x128xf32>
    %73 = vector.broadcast %72 : vector<1x128xf32> to vector<24x128xf32>
    %74 = arith.addf %71, %73 : vector<24x128xf32>
    %c1 = arith.constant 1 : index
    %75 = memref.load %arg1[%c1] : memref<2xf32, #tpu.memory_space<smem>>
    %cst_24 = arith.constant 0.000000e+00 : f32
    %76 = vector.broadcast %cst_24 : f32 to vector<24x128xf32>
    %77 = arith.cmpf oge, %74, %76 : vector<24x128xf32>
    %78 = vector.broadcast %75 : f32 to vector<24x128xf32>
    %79 = arith.mulf %78, %74 : vector<24x128xf32>
    %80 = arith.select %77, %74, %79 : vector<24x128xi1>, vector<24x128xf32>
    %81 = arith.truncf %80 : vector<24x128xf32> to vector<24x128xbf16>
    %c0_25 = arith.constant 0 : index
    %c0_26 = arith.constant 0 : index
    %82 = vector.load %arg7[%c0_25, %c0_26] : memref<128x128xbf16, #tpu.memory_space<vmem>>, vector<128x128xbf16>
    %cst_27 = arith.constant dense<0.000000e+00> : vector<24x128xf32>
    %83 = tpu.matmul %81, %82, %cst_27 {dimension_numbers = #tpu.dot_dimension_numbers<[1], [0], [0], [1], [0, 0, 1, 1], [], []>} : vector<24x128xbf16>, vector<128x128xbf16>, vector<24x128xf32> -> vector<24x128xf32>
    %c0_28 = arith.constant 0 : index
    %c0_29 = arith.constant 0 : index
    %84 = vector.load %arg8[%c0_28, %c0_29] : memref<1x128xf32, #tpu.memory_space<vmem>>, vector<1x128xf32>
    %85 = vector.broadcast %84 : vector<1x128xf32> to vector<24x128xf32>
    %86 = arith.addf %83, %85 : vector<24x128xf32>
    %c0_30 = arith.constant 0 : index
    %c0_31 = arith.constant 0 : index
    %87 = vector.load %arg9[%c0_30, %c0_31] : memref<24x128xf32, #tpu.memory_space<vmem>>, vector<24x128xf32>
    tpu.vector_store %arg9[%c0_30, %c0_31], %86 {strides = array<i32>} : memref<24x128xf32, #tpu.memory_space<vmem>>, vector<24x128xf32>,
    return
  }
  func.func @transform_0(%arg0: i32) -> i32 {
    %c0_i32 = arith.constant 0 : i32
    %c0_i32_0 = arith.constant 0 : i32
    return %c0_i32 : i32
  }
  func.func @transform_1(%arg0: i32) -> (i32, i32) {
    %c0_i32 = arith.constant 0 : i32
    %c0_i32_0 = arith.constant 0 : i32
    return %arg0, %c0_i32 : i32, i32
  }
  func.func @transform_2(%arg0: i32) -> (i32, i32) {
    %c0_i32 = arith.constant 0 : i32
    %c0_i32_0 = arith.constant 0 : i32
    %c0_i32_1 = arith.constant 0 : i32
    return %c0_i32, %c0_i32_0 : i32, i32
  }
  func.func @transform_3(%arg0: i32) -> (i32, i32) {
    %c0_i32 = arith.constant 0 : i32
    %c0_i32_0 = arith.constant 0 : i32
    %c0_i32_1 = arith.constant 0 : i32
    return %c0_i32, %c0_i32_0 : i32, i32
  }
  func.func @transform_4(%arg0: i32) -> (i32, i32) {
    %c0_i32 = arith.constant 0 : i32
    %c0_i32_0 = arith.constant 0 : i32
    %c0_i32_1 = arith.constant 0 : i32
    return %c0_i32, %c0_i32_0 : i32, i32
  }
  func.func @transform_5(%arg0: i32) -> (i32, i32) {
    %c0_i32 = arith.constant 0 : i32
    %c0_i32_0 = arith.constant 0 : i32
    %c0_i32_1 = arith.constant 0 : i32
    return %c0_i32, %c0_i32_0 : i32, i32
  }
  func.func @transform_6(%arg0: i32) -> (i32, i32) {
    %c0_i32 = arith.constant 0 : i32
    %c0_i32_0 = arith.constant 0 : i32
    %c0_i32_1 = arith.constant 0 : i32
    return %c0_i32, %c0_i32_0 : i32, i32
  }
  func.func @transform_7(%arg0: i32) -> (i32, i32) {
    %c0_i32 = arith.constant 0 : i32
    %c0_i32_0 = arith.constant 0 : i32
    %c0_i32_1 = arith.constant 0 : i32
    return %c0_i32, %c0_i32_0 : i32, i32
  }
  func.func @transform_8(%arg0: i32) -> (i32, i32) {
    %c0_i32 = arith.constant 0 : i32
    %c0_i32_0 = arith.constant 0 : i32
    return %arg0, %c0_i32 : i32, i32
  }
}

</mosaic_0001>

<bundles_post_ra>
// kernel: decoder_forward.1
= control target key start
LH: loop header
LB: loop body
LE: loop exit
PB: predicated region body
PF: predicated region fallthrough
CT: control target
= control target key end

     0   :  { %13 = vsyncpa [#allocation3], 0  ;;  %s1138_s27 = smov 0   ;;  %s1295_s0 = inlined_call_operand.vmem [shape: f32[2], index: 0, kind: input, shape index: {}]   ;;  %s1296_s1 = inlined_call_operand.vmem [shape: f32[48,128], index: 1, kind: input, shape index: {}]   ;;  %s1297_s2 = inlined_call_operand.vmem [shape: bf16[128,128], index: 2, kind: input, shape index: {}]   ;;  %s1298_s3 = inlined_call_operand.vmem [shape: f32[3,128], index: 3, kind: input, shape index: {}]   ;;  %s1299_s4 = inlined_call_operand.vmem [shape: bf16[128,128], index: 4, kind: input, shape index: {}]   ;;  %s1300_s5 = inlined_call_operand.vmem [shape: f32[3,128], index: 5, kind: input, shape index: {}]   ;;  %s1301_s6 = inlined_call_operand.vmem [shape: bf16[128,128], index: 6, kind: input, shape index: {}]   ;;  %s1302_s7 = inlined_call_operand.vmem [shape: f32[1,128], index: 7, kind: input, shape index: {}]   ;;  %s1303_s8 = inlined_call_operand.vmem [shape: f32[48,128], index: 8, kind: output, shape index: {}]  }
   0x1 LB: > { %s883_s28 = sadd.s32 4294967295, %s1090_s27   ;;  %p885_p0 = scmp.ge.s32.totalorder %s1090_s27, 1  ;;  %s1090_s27 = sphi %s1138_s27, %s19_s27  }
   0x2   : > { %p223_p1 = scmp.lt.s32.totalorder %s1090_s27, 3  ;;  %s236_s9 = sshll.u32 %s1295_s0, 4  ;;  %s237_s9 = int_to_ptr.vmem [resolvable:$true] %s236_s9 }
   0x3   : > { %p1153_p3 = scmp.eq.s32.totalorder %s883_s28, 0  ;;  %s1065_s12 = scalar_lea.vmem %s237_s9, 16 }
   0x4   : > { %p1149_p2 = pnand %p885_p0, %p223_p1  ;;  %p1066_p6 = scmp.ne.s32.totalorder %s237_s9, %s1065_s12 }
   0x5   : > { %p1073_p10 = scmp.lt.s32.totalorder %s237_s9, %s237_s9  ;;  %p1074_p11 = scmp.lt.s32.totalorder %s1065_s12, %s1065_s12 }
   0x6   : > { %p1014_p4 = pneg %p1149_p2 }
   0x7   : > { %p1075_p12 = por %p1074_p11, %p1073_p10 }
   0x8   : > { %p1015_p5 = pnand %p1153_p3, %p1014_p4 }
   0xa   : > { %p1067_p7 = pneg %p1015_p5 }
   0xc   : > { %p1068_p8 = pnand %p1067_p7, %p1066_p6 }
   0xe   : > { %p1069_p9 = pneg %p1068_p8 }
  0x10   : > { %p1076_p13 = pnand %p1075_p12, %p1069_p9 }
  0x12   : > { %1079 = shalt.err (!%p1076_p13)
}
  0x13   : > { %s1092_s13 = smov [#allocation2]   ;;  %276 = sbr.rel (%p1149_p2) target bundleno = 1354 (0x54a), region = 52 }
  0x14   : > { %1017 = dma.vmem_to_smem (!%p1015_p5), %s237_s9, 16, %s1092_s13, [#allocation3]  }
  0x1a   : > { %1085 = dma.done.wait (%p1153_p3), [#allocation3], 16  }
  0x1b   : > { %1087 = vsyncadd (%p1153_p3), [#allocation3], 4294967280 }
  0x1c   : > { %282 = sfence }
  0x1d   : > { %v1029_v0 = vld [vmem:[%s1297_s2] sm:$0xff]   ;;  %s311_s16 = smul.u32 3, %s883_s28  ;;  %v1030_v1 = vld [vmem:[%s1297_s2 + $0x8] sm:$0xff]   ;;  %v1031_v2 = vld [vmem:[%s1297_s2 + $0x10] sm:$0xff]   ;;  %v346_v13 = vlaneseq  ;;  %s499_s13 = sld [smem:[#allocation2]] }
  0x1e   : > { %950 = vmatprep.subr.bf16.mxu0 %v1029_v0  ;;  %v1032_v3 = vld [vmem:[%s1297_s2 + $0x18] sm:$0xff]   ;;  %v1033_v7 = vld [vmem:[%s1297_s2 + $0x20] sm:$0xff]   ;;  %v1034_v8 = vld [vmem:[%s1297_s2 + $0x28] sm:$0xff]  }
  0x1f   : > { %p312_p0 = scmp.lt.s32.totalorder %s311_s16, 5  ;;  %951 = vmatpush3.bf16.msra.mxu0 %v1029_v0  ;;  %v1035_v9 = vld [vmem:[%s1297_s2 + $0x30] sm:$0xff]   ;;  %v1036_v10 = vld [vmem:[%s1297_s2 + $0x38] sm:$0xff]   ;;  %v1199_v14 = vshrl.u32 %v346_v13, 7  ;;  %v1205_v16 = vld [vmem:[%s1298_s3] sm:$0x7] }
  0x20   : > { %952 = vmatprep.subr.bf16.mxu0 %v1030_v1  ;;  %v1037_v25 = vld [vmem:[%s1299_s4] sm:$0xff]   ;;  %v1213_v26 = vand.u32 127, %v346_v13  ;;  %v1038_v42 = vld [vmem:[%s1299_s4 + $0x8] sm:$0xff]   ;;  %v1039_v43 = vld [vmem:[%s1299_s4 + $0x10] sm:$0xff]  }
  0x21   : > { %s1307_s16 = smov (!%p312_p0, %s311_s16), 5  ;;  %v348_v15 = vsub.s32 0, %v1199_v14  ;;  %970 = vmatprep.subr.bf16.mxu1 %v1037_v25  ;;  %v1040_v44 = vld [vmem:[%s1299_s4 + $0x18] sm:$0xff]   ;;  %v1041_v45 = vld [vmem:[%s1299_s4 + $0x20] sm:$0xff]   ;;  %v1042_v46 = vld [vmem:[%s1299_s4 + $0x28] sm:$0xff]   ;;  %v487_v58 = vsub.s32 1, %v1199_v14 }
  0x22   : > { %s890_s21 = sshll.u32 %s1307_s16, 3  ;;  %971 = vmatpush3.bf16.msra.mxu1 %v1037_v25  ;;  %vm460_vm0 = vcmp.lt.s32.totalorder %v1213_v26, 32  ;;  %v1043_v47 = vld [vmem:[%s1299_s4 + $0x30] sm:$0xff]   ;;  %v1044_v48 = vld [vmem:[%s1299_s4 + $0x38] sm:$0xff]   ;;  %v494_v59 = vsub.s32 2, %v1199_v14  ;;  %vm641_vm4 = vcmp.lt.s32.totalorder %v1213_v26, 16 }
  0x23   : > { %953 = vmatpush3.bf16.msra.mxu0 %v1030_v1  ;;  %s315_s24 = scalar_lea.vmem %s1296_s1, %s890_s21  ;;  %v349_v17 = vrot.slane %v1205_v16, %v348_v15  ;;  %972 = vmatprep.subr.bf16.mxu1 %v1038_v42  ;;  %v488_v60 = vrot.slane %v1205_v16, %v487_v58  ;;  %v1047_v26 = vld [vmem:[%s1301_s6 + $0x10] sm:$0xff]   ;;  %s321_s19 = scalar_lea.vmem %s1303_s8, %s890_s21 }
  0x24   : > { %954 = vmatprep.subr.bf16.mxu0 %v1031_v2  ;;  %v324_v4 = vld [vmem:[%s315_s24] sm:$0xff]  ;;  %v325_v5 = vld [vmem:[%s315_s24 + $0x8] sm:$0xff]  ;;  %v326_v11 = vld [vmem:[%s315_s24 + $0x10] sm:$0xff]  ;;  %v495_v63 = vrot.slane %v1205_v16, %v494_v59 }
  0x25   : > { %v327_v6 = vpack.c.bf16 %v325_v5, %v324_v4  ;;  %v328_v12 = vpack.c.bf16 %v326_v11, %v326_v11 }
  0x26   : > { %973 = vmatpush3.bf16.msra.mxu1 %v1038_v42 }
  0x27   : > { %955 = vmatpush3.bf16.msra.mxu0 %v1031_v2  ;;  %966 = vmatprep.mubr.bf16.mxu0 %v327_v6  ;;  %v503_v6 = vstv %s499_s13  ;;  %s908_s13 = sld [smem:[#allocation2 + $0x1]] }
  0x28   : > { %956 = vmatprep.subr.bf16.mxu0 %v1032_v3  ;;  %974 = vmatprep.subr.bf16.mxu1 %v1039_v43 }
  0x2a   : > { %975 = vmatpush3.bf16.msra.mxu1 %v1039_v43 }
  0x2b   : > { %957 = vmatpush3.bf16.msra.mxu0 %v1032_v3  ;;  %976 = vmatprep.subr.bf16.mxu1 %v1040_v44 }
  0x2c   : > { %958 = vmatprep.subr.bf16.mxu0 %v1033_v7 }
  0x2e   : > { %977 = vmatpush3.bf16.msra.mxu1 %v1040_v44 }
  0x2f   : > { %959 = vmatpush3.bf16.msra.mxu0 %v1033_v7  ;;  %978 = vmatprep.subr.bf16.mxu1 %v1041_v45 }
  0x30   : > { %960 = vmatprep.subr.bf16.mxu0 %v1034_v8 }
  0x32   : > { %979 = vmatpush3.bf16.msra.mxu1 %v1041_v45 }
  0x33   : > { %961 = vmatpush3.bf16.msra.mxu0 %v1034_v8  ;;  %980 = vmatprep.subr.bf16.mxu1 %v1042_v46 }
  0x34   : > { %962 = vmatprep.subr.bf16.mxu0 %v1035_v9 }
  0x36   : > { %981 = vmatpush3.bf16.msra.mxu1 %v1042_v46  ;;  %v1046_v46 = vld [vmem:[%s1301_s6 + $0x8] sm:$0xff]  }
  0x37   : > { %963 = vmatpush3.bf16.msra.mxu0 %v1035_v9  ;;  %982 = vmatprep.subr.bf16.mxu1 %v1043_v47 }
  0x38   : > { %964 = vmatprep.subr.bf16.mxu0 %v1036_v10 }
  0x3a   : > { %983 = vmatpush3.bf16.msra.mxu1 %v1043_v47  ;;  %v1048_v47 = vld [vmem:[%s1301_s6 + $0x18] sm:$0xff]  }
  0x3b   : > { %965 = vmatpush3.bf16.msra.mxu0 %v1036_v10  ;;  %984 = vmatprep.subr.bf16.mxu1 %v1044_v48 }
  0x3e   : > { %967 = vmatmul.mubr.bf16.vlgmr.msra.gmra.mrb[0].mxu0 %v328_v12  ;;  %985 = vmatpush3.bf16.msra.mxu1 %v1044_v48  ;;  %v1049_v48 = vld [vmem:[%s1301_s6 + $0x20] sm:$0xff]  }
 0x111   : > { %v968_v18 = vpop.f32.mrb[0].mxu0 }
 0x112   : > { %v441_v19 = vadd.f32 %v968_v18, %v349_v17  ;;  %v432_v20 = vpop.f32.mrb[1].mxu0 }
 0x113   : > { %v433_v21 = vadd.f32 %v432_v20, %v349_v17  ;;  %v969_v22 = vpop.f32.mrb[2].mxu0 }
 0x114   : > { %450 = vadd.xlane.f32.xlu1 %v441_v19  ;;  %v435_v23 = vpop.f32.mrb[3].mxu0 }
 0x115   : > { %446 = vadd.xlane.f32.xlu0 %v433_v21  ;;  %v436_v24 = vadd.f32 %v435_v23, %v349_v17 }
 0x119   : > { %448 = vadd.xlane.f32.xlu0 %v436_v24 }
 0x1a1   : > { %v451_v27 = vpop.xlane.xlu1 %450 }
 0x1a2   : > { %v454_v28 = vmul.f32 0.03125, %v451_v27  ;;  %v447_v29 = vpop.xlane.xlu0 %446 }
 0x1a3   : > { %v452_v30 = vmul.f32 0.03125, %v447_v29 }
 0x1a4   : > { %v457_v31 = vsub.f32 %v441_v19, %v454_v28 }
 0x1a5   : > { %v455_v32 = vsub.f32 %v433_v21, %v452_v30  ;;  %v1248_v21 = vld [vmem:[%s1300_s5] sm:$0x7] }
 0x1a6   : > { %v449_v33 = vpop.xlane.xlu0 %448  ;;  %v463_v38 = vsel %vm460_vm0, %v457_v31, 0.0  ;;  %v532_v22 = vrot.slane %v1248_v21, %v348_v15  ;;  %v1045_v31 = vld [vmem:[%s1301_s6] sm:$0xff]  }
 0x1a7   : > { %v453_v34 = vmul.f32 0.03125, %v449_v33  ;;  %v461_v35 = vsel %vm460_vm0, %v455_v32, 0.0  ;;  %v466_v40 = vmul.f32 %v463_v38, %v463_v38  ;;  %990 = vmatprep.subr.bf16.mxu0 %v1045_v31 }
 0x1a8   : > { %v464_v36 = vmul.f32 %v461_v35, %v461_v35  ;;  %991 = vmatpush3.bf16.msra.mxu0 %v1045_v31 }
 0x1a9   : > { %v456_v37 = vsub.f32 %v436_v24, %v453_v34  ;;  %992 = vmatprep.subr.bf16.mxu0 %v1046_v46 }
 0x1aa   : > { %467 = vadd.xlane.f32.xlu1 %v464_v36 }
 0x1ab   : > { %v462_v39 = vsel %vm460_vm0, %v456_v37, 0.0 }
 0x1ac   : > { %v465_v41 = vmul.f32 %v462_v39, %v462_v39  ;;  %993 = vmatpush3.bf16.msra.mxu0 %v1046_v46 }
 0x1ad   : > { %994 = vmatprep.subr.bf16.mxu0 %v1047_v26 }
 0x1ae   : > { %471 = vadd.xlane.f32.xlu1 %v466_v40  ;;  %469 = vadd.xlane.f32.xlu0 %v465_v41 }
 0x1b0   : > { %995 = vmatpush3.bf16.msra.mxu0 %v1047_v26 }
 0x1b1   : > { %996 = vmatprep.subr.bf16.mxu0 %v1048_v47 }
 0x1b4   : > { %997 = vmatpush3.bf16.msra.mxu0 %v1048_v47 }
 0x1b5   : > { %998 = vmatprep.subr.bf16.mxu0 %v1049_v48 }
 0x1b8   : > { %999 = vmatpush3.bf16.msra.mxu0 %v1049_v48 }
 0x237   : > { %v468_v49 = vpop.xlane.xlu1 %467 }
 0x238   : > { %v473_v50 = vmul.f32 0.03125, %v468_v49  ;;  %v1050_v49 = vld [vmem:[%s1301_s6 + $0x28] sm:$0xff]  }
 0x239   : > { %1000 = vmatprep.subr.bf16.mxu0 %v1050_v49 }
 0x23a   : > { %v476_v51 = vadd.f32 1e-05, %v473_v50  ;;  %1001 = vmatpush3.bf16.msra.mxu0 %v1050_v49  ;;  %v1051_v50 = vld [vmem:[%s1301_s6 + $0x30] sm:$0xff]  }
 0x23b   : > { %v472_v52 = vpop.xlane.xlu1 %471  ;;  %v470_v53 = vpop.xlane.xlu0 %469  ;;  %1002 = vmatprep.subr.bf16.mxu0 %v1051_v50 }
 0x23c   : > { %1053 = vrsqrt.f32 %v476_v51  ;;  %v475_v54 = vmul.f32 0.03125, %v472_v52  ;;  %v474_v55 = vmul.f32 0.03125, %v470_v53  ;;  %v1052_v51 = vld [vmem:[%s1301_s6 + $0x38] sm:$0xff]  }
 0x23e   : > { %v478_v56 = vadd.f32 1e-05, %v475_v54  ;;  %v477_v57 = vadd.f32 1e-05, %v474_v55  ;;  %1003 = vmatpush3.bf16.msra.mxu0 %v1051_v50 }
 0x23f   : > { %1004 = vmatprep.subr.bf16.mxu0 %v1052_v51 }
 0x240   : > { %1055 = vrsqrt.f32 %v478_v56 }
 0x241   : > { %1057 = vrsqrt.f32 %v477_v57 }
 0x242   : > { %1005 = vmatpush3.bf16.msra.mxu0 %v1052_v51 }
 0x246   : > { %v1054_v61 = vpop.eup %1053 }
 0x247   : > { %v482_v62 = vmul.f32 %v1054_v61, %v461_v35 }
 0x249   : > { %v489_v0 = vmul.f32 %v488_v60, %v482_v62 }
 0x24a   : > { %v1056_v1 = vpop.eup %1055 }
 0x24b   : > { %v1058_v2 = vpop.eup %1057  ;;  %v484_v3 = vmul.f32 %v1056_v1, %v463_v38  ;;  %v496_v5 = vadd.f32 %v495_v63, %v489_v0  ;;  %v676_v1 = vrot.slane %v1248_v21, %v494_v59 }
 0x24c   : > { %v483_v4 = vmul.f32 %v1058_v2, %v462_v39 }
 0x24d   : > { %v491_v7 = vmul.f32 %v488_v60, %v484_v3  ;;  %v504_v11 = vmul.f32 %v503_v6, %v496_v5  ;;  %vm500_vm1 = vcmp.ge.f32.partialorder %v496_v5, 0.0 }
 0x24e   : > { %v490_v8 = vmul.f32 %v488_v60, %v483_v4 }
 0x24f   : > { %v498_v9 = vadd.f32 %v495_v63, %v491_v7  ;;  %v507_v18 = vsel %vm500_vm1, %v496_v5, %v504_v11  ;;  %v684_v7 = vstv %s908_s13 }
 0x250   : > { %v497_v10 = vadd.f32 %v495_v63, %v490_v8  ;;  %v669_v63 = vrot.slane %v1248_v21, %v487_v58  ;;  %v909_v21 = vld [vmem:[%s1302_s7] ss:$0 sm:$0xff] }
 0x251   : > { %vm502_vm2 = vcmp.ge.f32.partialorder %v498_v9, 0.0  ;;  %v506_v12 = vmul.f32 %v503_v6, %v498_v9 }
 0x252   : > { %vm501_vm3 = vcmp.ge.f32.partialorder %v497_v10, 0.0  ;;  %v505_v13 = vmul.f32 %v503_v6, %v497_v10 }
 0x253   : > { %v509_v17 = vsel %vm502_vm2, %v498_v9, %v506_v12 }
 0x254   : > { %v508_v16 = vsel %vm501_vm3, %v497_v10, %v505_v13  ;;  %v511_v19 = vpack.c.bf16 %v509_v17, %v509_v17 }
 0x255   : > { %v510_v20 = vpack.c.bf16 %v508_v16, %v507_v18 }
 0x257   : > { %986 = vmatprep.mubr.bf16.mxu1 %v510_v20 }
 0x258   : > { %987 = vmatmul.mubr.bf16.vlgmr.msra.gmra.mrb[0].mxu1 %v511_v19 }
 0x32b   : > { %v988_v23 = vpop.f32.mrb[0].mxu1 }
 0x32c   : > { %v615_v24 = vpop.f32.mrb[1].mxu1  ;;  %v624_v30 = vadd.f32 %v988_v23, %v532_v22 }
 0x32d   : > { %v616_v25 = vadd.f32 %v615_v24, %v532_v22  ;;  %v989_v27 = vpop.f32.mrb[2].mxu1 }
 0x32e   : > { %v618_v28 = vpop.f32.mrb[3].mxu1 }
 0x32f   : > { %v619_v29 = vadd.f32 %v618_v28, %v532_v22  ;;  %629 = vadd.xlane.f32.xlu0 %v616_v25 }
 0x331   : > { %631 = vadd.xlane.f32.xlu1 %v619_v29 }
 0x333   : > { %633 = vadd.xlane.f32.xlu0 %v624_v30 }
 0x3bc   : > { %v630_v32 = vpop.xlane.xlu0 %629 }
 0x3bd   : > { %v635_v33 = vmul.f32 0.0625, %v630_v32 }
 0x3be   : > { %v632_v34 = vpop.xlane.xlu1 %631 }
 0x3bf   : > { %v638_v15 = vsub.f32 %v616_v25, %v635_v33  ;;  %v636_v35 = vmul.f32 0.0625, %v632_v34 }
 0x3c0   : > { %v634_v36 = vpop.xlane.xlu0 %633 }
 0x3c1   : > { %v639_v37 = vsub.f32 %v619_v29, %v636_v35  ;;  %v637_v38 = vmul.f32 0.0625, %v634_v36  ;;  %v642_v39 = vsel %vm641_vm4, %v638_v15, 0.0 }
 0x3c2   : > { %v645_v40 = vmul.f32 %v642_v39, %v642_v39 }
 0x3c3   : > { %v640_v41 = vsub.f32 %v624_v30, %v637_v38  ;;  %v643_v42 = vsel %vm641_vm4, %v639_v37, 0.0 }
 0x3c4   : > { %648 = vadd.xlane.f32.xlu1 %v645_v40  ;;  %v646_v43 = vmul.f32 %v643_v42, %v643_v42 }
 0x3c5   : > { %v644_v44 = vsel %vm641_vm4, %v640_v41, 0.0 }
 0x3c6   : > { %650 = vadd.xlane.f32.xlu0 %v646_v43  ;;  %v647_v45 = vmul.f32 %v644_v44, %v644_v44 }
 0x3c8   : > { %652 = vadd.xlane.f32.xlu1 %v647_v45 }
 0x451   : > { %v649_v52 = vpop.xlane.xlu1 %648 }
 0x452   : > { %v654_v53 = vmul.f32 0.0625, %v649_v52 }
 0x453   : > { %v651_v54 = vpop.xlane.xlu0 %650 }
 0x454   : > { %v657_v55 = vadd.f32 1e-05, %v654_v53  ;;  %v655_v56 = vmul.f32 0.0625, %v651_v54 }
 0x455   : > { %v653_v57 = vpop.xlane.xlu1 %652 }
 0x456   : > { %1059 = vrsqrt.f32 %v657_v55  ;;  %v658_v60 = vadd.f32 1e-05, %v655_v56  ;;  %v656_v61 = vmul.f32 0.0625, %v653_v57 }
 0x458   : > { %1061 = vrsqrt.f32 %v658_v60  ;;  %v659_v62 = vadd.f32 1e-05, %v656_v61 }
 0x45a   : > { %1063 = vrsqrt.f32 %v659_v62 }
 0x460   : > { %v1060_v0 = vpop.eup %1059 }
 0x461   : > { %v663_v2 = vmul.f32 %v1060_v0, %v642_v39 }
 0x462   : > { %v1062_v3 = vpop.eup %1061 }
 0x463   : > { %v664_v4 = vmul.f32 %v1062_v3, %v643_v42  ;;  %v670_v5 = vmul.f32 %v669_v63, %v663_v2 }
 0x464   : > { %v1064_v6 = vpop.eup %1063 }
 0x465   : > { %v665_v8 = vmul.f32 %v1064_v6, %v644_v44  ;;  %v671_v9 = vmul.f32 %v669_v63, %v664_v4  ;;  %v677_v10 = vadd.f32 %v676_v1, %v670_v5 }
 0x467   : > { %v672_v11 = vmul.f32 %v669_v63, %v665_v8  ;;  %v678_v12 = vadd.f32 %v676_v1, %v671_v9  ;;  %v685_v13 = vmul.f32 %v684_v7, %v677_v10  ;;  %vm681_vm5 = vcmp.ge.f32.partialorder %v677_v10, 0.0 }
 0x469   : > { %vm682_vm6 = vcmp.ge.f32.partialorder %v678_v12, 0.0  ;;  %v686_v58 = vmul.f32 %v684_v7, %v678_v12  ;;  %v679_v17 = vadd.f32 %v676_v1, %v672_v11  ;;  %v688_v14 = vsel %vm681_vm5, %v677_v10, %v685_v13 }
 0x46b   : > { %v689_v18 = vsel %vm682_vm6, %v678_v12, %v686_v58  ;;  %vm683_vm7 = vcmp.ge.f32.partialorder %v679_v17, 0.0  ;;  %v687_v59 = vmul.f32 %v684_v7, %v679_v17 }
 0x46c   : > { %v691_v16 = vpack.c.bf16 %v689_v18, %v688_v14 }
 0x46d   : > { %v690_v19 = vsel %vm683_vm7, %v679_v17, %v687_v59 }
 0x46e   : > { %1006 = vmatprep.mubr.bf16.mxu0 %v691_v16  ;;  %v692_v20 = vpack.c.bf16 %v690_v19, %v690_v19 }
 0x470   : > { %1007 = vmatmul.mubr.bf16.vlgmr.msra.gmra.mrb[4].mxu0 %v692_v20 }
 0x543   : > { %v1008_v22 = vpop.f32.mrb[4].mxu0 }
 0x544   : > { %v807_v23 = vadd.f32 %v1008_v22, %v909_v21  ;;  %v798_v24 = vpop.f32.mrb[5].mxu0 }
 0x545   : > { %v799_v25 = vadd.f32 %v909_v21, %v798_v24  ;;  %v1009_v27 = vpop.f32.mrb[6].mxu0 }
 0x546   : > { %814 = vst [vmem:[%s321_s19 + $0x10] sm:$0xff] %v807_v23  ;;  %v801_v28 = vpop.f32.mrb[7].mxu0 }
 0x547   : > { %812 = vst [vmem:[%s321_s19] sm:$0xff] %v799_v25  ;;  %v802_v29 = vadd.f32 %v909_v21, %v801_v28 }
 0x549   : > { %813 = vst [vmem:[%s321_s19 + $0x8] sm:$0xff] %v802_v29 }
 0x54a PF: > { %s19_s27 = sadd.s32 1, %s1090_s27  }
 0x54b   : > { %p16_p1 = scmp.ge.s32.totalorder %s19_s27, 4  }
 0x54d   :  { %18 = sbr.rel (!%p16_p1) target bundleno = 1 (0x1), region = 87 }
 0x554   :  { %837 = vsyncpa [#allocation3], 1 }
 0x555   :  { %839 = vsyncpa [#allocation3 + $0x1], 1 }

</bundles_post_ra>
